<compile_context>
chip_gen: v5e
topology: v5e:2x2
jax: 0.10.0
libtpu: 0.0.40
codegen_flags: <defaults>
</compile_context>

<pallas_src>
import functools

import jax
import jax.numpy as jnp
from jax.experimental import pallas as pl
from jax.experimental.pallas import tpu as pltpu

WIDTH = 100      # matches `width = 100` in the PyTorch script
LANE = 128


def mlp_kernel(x_ref, w1_ref, b1_ref, w2_ref, b2_ref, w3_ref, b3_ref, o_ref):
    # x_ref: (1, tm)     batch on lanes
    # w1:    (WP, 1)     fc1 weight column (in_features=1)
    # b1:    (WP, 1)
    # w2:    (WP, WP)    fc2 weight in (out, in) layout
    # b2:    (WP, 1)
    # w3:    (WP, 1)     fc3 weight column (out_features=1)
    # b3:    (1, 1)      scalar in SMEM
    # o_ref: (1, tm)
    x = x_ref[...]                                                   # (1, tm) f32

    # Layer 1: K=1 contraction -> pure VPU broadcast multiply-add (no MXU).
    h1 = jnp.tanh(w1_ref[...] * x + b1_ref[...])                     # (WP, tm)

    # Layer 2: the single MXU matmul, lane dim = tm (large, lane-dense).
    h2 = jnp.dot(w2_ref[...], h1, preferred_element_type=jnp.float32)
    h2 = jnp.tanh(h2 + b2_ref[...])                                  # (WP, tm)

    # Layer 3: M=1 row -> VPU multiply + XLU sublane reduction (keeps MXU free).
    y = jnp.sum(w3_ref[...] * h2, axis=0, keepdims=True) + b3_ref[0, 0]
    o_ref[...] = y.astype(o_ref.dtype)                               # (1, tm)


def _round_up(n, m):
    return ((n + m - 1) // m) * m


def _pad_to(a, shape):
    return jnp.pad(a, [(0, s - d) for d, s in zip(a.shape, shape)])


def prepare_params(params):
    """One-time layout prep: transpose to (out, in) where needed and zero-pad the
    hidden width to a multiple of 128.  Call once; keep OUT of the per-call hot path."""
    w1, b1, w2, b2, w3, b3 = (
        params["w1"], params["b1"], params["w2"],
        params["b2"], params["w3"], params["b3"],
    )
    W = w1.shape[1]
    WP = _round_up(W, LANE)                          # 100 -> 128
    return {
        "w1c": _pad_to(w1.T, (WP, 1)),               # (WP, 1)
        "b1c": _pad_to(b1.reshape(W, 1), (WP, 1)),   # (WP, 1)  padded rows are 0
        "w2t": _pad_to(w2.T, (WP, WP)),              # (WP, WP) (out, in) layout
        "b2c": _pad_to(b2.reshape(W, 1), (WP, 1)),   # (WP, 1)
        "w3c": _pad_to(w3, (WP, 1)),                 # (WP, 1)  fc3 weight column
        "b3": b3.reshape(1, 1),                      # (1, 1)   scalar -> SMEM
    }


@functools.partial(jax.jit, static_argnames=("tm",))
def net_forward(x, prepped, *, tm=4096):
    """x: (N, 1) float32.  prepped: output of prepare_params()."""
    N = x.shape[0]
    WP = prepped["w2t"].shape[0]

    # Batch on the lane axis, padded to lane-aligned tiles.
    NP0 = _round_up(max(N, 1), LANE)
    # Cap tm_eff at ~half the padded batch so the grid has >=2 steps when N is big
    # enough (lets v7x shard the "parallel" axis across both TensorCores); otherwise
    # use as large a tile as possible to amortize per-step overhead.
    half = _round_up((NP0 + 1) // 2, LANE)
    tm_eff = _round_up(max(LANE, min(tm, half)), LANE)
    NP = _round_up(N, tm_eff)
    xT = _pad_to(x.reshape(1, N), (1, NP))           # (1, NP)

    grid = (NP // tm_eff,)
    full = lambda shape: pl.BlockSpec(shape, lambda i: (0, 0))

    yT = pl.pallas_call(
        mlp_kernel,
        out_shape=jax.ShapeDtypeStruct((1, NP), x.dtype),
        grid_spec=pltpu.PrefetchScalarGridSpec(
            num_scalar_prefetch=0,
            grid=grid,
            in_specs=[
                pl.BlockSpec((1, tm_eff), lambda i: (0, i)),          # x tile
                full((WP, 1)),                                        # w1
                full((WP, 1)),                                        # b1
                full((WP, WP)),                                       # w2 (out, in)
                full((WP, 1)),                                        # b2
                full((WP, 1)),                                        # w3 column
                pl.BlockSpec(memory_space=pltpu.MemorySpace.SMEM),    # b3 scalar
            ],
            out_specs=pl.BlockSpec((1, tm_eff), lambda i: (0, i)),
        ),
        compiler_params=pltpu.CompilerParams(
            # "parallel" lets v7x shard grid steps across its 2 TensorCores.
            dimension_semantics=("parallel",),
        ),
    )(xT, prepped["w1c"], prepped["b1c"], prepped["w2t"], prepped["b2c"],
      prepped["w3c"], prepped["b3"])

    return yT[0, :N].reshape(N, 1)


def init_params(key, width):
    """Deterministic init mirroring nn.Linear shapes (stored as (in, out))."""
    k1, k2, k3, k4, k5, k6 = jax.random.split(key, 6)
    scale1 = 1.0                      # 1/sqrt(in_features=1)
    scale2 = 1.0 / jnp.sqrt(width)
    return {
        "w1": jax.random.uniform(k1, (1, width), jnp.float32, -scale1, scale1),
        "b1": jax.random.uniform(k2, (1, width), jnp.float32, -scale1, scale1),
        "w2": jax.random.uniform(k3, (width, width), jnp.float32, -scale2, scale2),
        "b2": jax.random.uniform(k4, (1, width), jnp.float32, -scale2, scale2),
        "w3": jax.random.uniform(k5, (width, 1), jnp.float32, -scale2, scale2),
        "b3": jax.random.uniform(k6, (1, 1), jnp.float32, -scale2, scale2),
    }


def net_forward_ref(x, p):
    h1 = jnp.tanh(x @ p["w1"] + p["b1"])
    h2 = jnp.tanh(h1 @ p["w2"] + p["b2"])
    return h2 @ p["w3"] + p["b3"]


if __name__ == "__main__":
    key = jax.random.PRNGKey(0)
    k_param, k_x1, k_x2 = jax.random.split(key, 3)

    params = init_params(k_param, WIDTH)
    prepped = prepare_params(params)   # one-time layout prep, outside the hot path

    # Small batch of scalar inputs (single grid step).
    x_small = jax.random.normal(k_x1, (16, 1), jnp.float32)
    y_small = jax.block_until_ready(net_forward(x_small, prepped))
    y_ref_small = net_forward_ref(x_small, params)
    assert y_small.shape == (16, 1)
    assert jnp.allclose(y_small, y_ref_small, atol=1e-4, rtol=1e-4)

    # Batch big enough to exercise the >=2-grid-step (dual-TensorCore) path + padding.
    x_med = jax.random.normal(k_x2, (300, 1), jnp.float32)
    y_med = jax.block_until_ready(net_forward(x_med, prepped))
    y_ref_med = net_forward_ref(x_med, params)
    assert y_med.shape == (300, 1)
    assert jnp.allclose(y_med, y_ref_med, atol=1e-4, rtol=1e-4)

    print("KERNEL_OK")
</pallas_src>

<mosaic_0001>
module attributes {stable_mosaic.version = 11 : i64} {
  func.func @mlp_kernel(%arg0: i32, %arg1: memref<1x128xf32, #tpu.memory_space<vmem>>, %arg2: memref<128x1xf32, #tpu.memory_space<vmem>>, %arg3: memref<128x1xf32, #tpu.memory_space<vmem>>, %arg4: memref<128x128xf32, #tpu.memory_space<vmem>>, %arg5: memref<128x1xf32, #tpu.memory_space<vmem>>, %arg6: memref<128x1xf32, #tpu.memory_space<vmem>>, %arg7: memref<1x1xf32, #tpu.memory_space<smem>>, %arg8: memref<1x128xf32, #tpu.memory_space<vmem>>) attributes {dimension_semantics = [#tpu.dimension_semantics<parallel>], iteration_bounds = array<i64: 1>, scalar_prefetch = 0 : i64, scratch_operands = 0 : i64, tpu.core_type = #tpu.core_type<tc>, window_params = [{transform_indices = @transform_0, window_bounds = array<i64: 1, 128>}, {pipeline_mode = #tpu.pipeline_mode<synchronous>, transform_indices = @transform_1, window_bounds = array<i64: 128, 1>}, {pipeline_mode = #tpu.pipeline_mode<synchronous>, transform_indices = @transform_2, window_bounds = array<i64: 128, 1>}, {pipeline_mode = #tpu.pipeline_mode<synchronous>, transform_indices = @transform_3, window_bounds = array<i64: 128, 128>}, {pipeline_mode = #tpu.pipeline_mode<synchronous>, transform_indices = @transform_4, window_bounds = array<i64: 128, 1>}, {pipeline_mode = #tpu.pipeline_mode<synchronous>, transform_indices = @transform_5, window_bounds = array<i64: 128, 1>}, {transform_indices = @transform_6, window_bounds = array<i64: 1, 1>}, {transform_indices = @transform_7, window_bounds = array<i64: 1, 128>}]} {
    %c0 = arith.constant 0 : index
    %c0_0 = arith.constant 0 : index
    %0 = vector.load %arg1[%c0, %c0_0] : memref<1x128xf32, #tpu.memory_space<vmem>>, vector<1x128xf32>
    %c0_1 = arith.constant 0 : index
    %c0_2 = arith.constant 0 : index
    %1 = vector.load %arg2[%c0_1, %c0_2] : memref<128x1xf32, #tpu.memory_space<vmem>>, vector<128x1xf32>
    %2 = vector.broadcast %1 : vector<128x1xf32> to vector<128x128xf32>
    %3 = vector.broadcast %0 : vector<1x128xf32> to vector<128x128xf32>
    %4 = arith.mulf %2, %3 : vector<128x128xf32>
    %c0_3 = arith.constant 0 : index
    %c0_4 = arith.constant 0 : index
    %5 = vector.load %arg3[%c0_3, %c0_4] : memref<128x1xf32, #tpu.memory_space<vmem>>, vector<128x1xf32>
    %6 = vector.broadcast %5 : vector<128x1xf32> to vector<128x128xf32>
    %7 = arith.addf %4, %6 : vector<128x128xf32>
    %8 = math.tanh %7 : vector<128x128xf32>
    %c0_5 = arith.constant 0 : index
    %c0_6 = arith.constant 0 : index
    %9 = vector.load %arg4[%c0_5, %c0_6] : memref<128x128xf32, #tpu.memory_space<vmem>>, vector<128x128xf32>
    %cst = arith.constant dense<0.000000e+00> : vector<128x128xf32>
    %10 = tpu.matmul %9, %8, %cst {dimension_numbers = #tpu.dot_dimension_numbers<[1], [0], [0], [1], [0, 0, 1, 1], [], []>} : vector<128x128xf32>, vector<128x128xf32>, vector<128x128xf32> -> vector<128x128xf32>
    %c0_7 = arith.constant 0 : index
    %c0_8 = arith.constant 0 : index
    %11 = vector.load %arg5[%c0_7, %c0_8] : memref<128x1xf32, #tpu.memory_space<vmem>>, vector<128x1xf32>
    %12 = vector.broadcast %11 : vector<128x1xf32> to vector<128x128xf32>
    %13 = arith.addf %10, %12 : vector<128x128xf32>
    %14 = math.tanh %13 : vector<128x128xf32>
    %c0_9 = arith.constant 0 : index
    %c0_10 = arith.constant 0 : index
    %15 = vector.load %arg6[%c0_9, %c0_10] : memref<128x1xf32, #tpu.memory_space<vmem>>, vector<128x1xf32>
    %16 = vector.broadcast %15 : vector<128x1xf32> to vector<128x128xf32>
    %17 = arith.mulf %16, %14 : vector<128x128xf32>
    %cst_11 = arith.constant dense<0.000000e+00> : vector<128xf32>
    %18 = vector.multi_reduction <add>, %17, %cst_11 [0] : vector<128x128xf32> to vector<128xf32>
    %19 = vector.shape_cast %18 : vector<128xf32> to vector<1x128xf32>
    %c0_12 = arith.constant 0 : index
    %c0_13 = arith.constant 0 : index
    %20 = memref.load %arg7[%c0_12, %c0_13] : memref<1x1xf32, #tpu.memory_space<smem>>
    %21 = vector.broadcast %20 : f32 to vector<1x128xf32>
    %22 = arith.addf %19, %21 : vector<1x128xf32>
    %c0_14 = arith.constant 0 : index
    %c0_15 = arith.constant 0 : index
    %23 = vector.load %arg8[%c0_14, %c0_15] : memref<1x128xf32, #tpu.memory_space<vmem>>, vector<1x128xf32>
    tpu.vector_store %arg8[%c0_14, %c0_15], %22 {strides = array<i32>} : memref<1x128xf32, #tpu.memory_space<vmem>>, vector<1x128xf32>,
    return
  }
  func.func @transform_0(%arg0: i32) -> (i32, i32) {
    %c0_i32 = arith.constant 0 : i32
    %c0_i32_0 = arith.constant 0 : i32
    return %c0_i32, %arg0 : i32, i32
  }
  func.func @transform_1(%arg0: i32) -> (i32, i32) {
    %c0_i32 = arith.constant 0 : i32
    %c0_i32_0 = arith.constant 0 : i32
    %c0_i32_1 = arith.constant 0 : i32
    return %c0_i32, %c0_i32_0 : i32, i32
  }
  func.func @transform_2(%arg0: i32) -> (i32, i32) {
    %c0_i32 = arith.constant 0 : i32
    %c0_i32_0 = arith.constant 0 : i32
    %c0_i32_1 = arith.constant 0 : i32
    return %c0_i32, %c0_i32_0 : i32, i32
  }
  func.func @transform_3(%arg0: i32) -> (i32, i32) {
    %c0_i32 = arith.constant 0 : i32
    %c0_i32_0 = arith.constant 0 : i32
    %c0_i32_1 = arith.constant 0 : i32
    return %c0_i32, %c0_i32_0 : i32, i32
  }
  func.func @transform_4(%arg0: i32) -> (i32, i32) {
    %c0_i32 = arith.constant 0 : i32
    %c0_i32_0 = arith.constant 0 : i32
    %c0_i32_1 = arith.constant 0 : i32
    return %c0_i32, %c0_i32_0 : i32, i32
  }
  func.func @transform_5(%arg0: i32) -> (i32, i32) {
    %c0_i32 = arith.constant 0 : i32
    %c0_i32_0 = arith.constant 0 : i32
    %c0_i32_1 = arith.constant 0 : i32
    return %c0_i32, %c0_i32_0 : i32, i32
  }
  func.func @transform_6(%arg0: i32) -> (i32, i32) {
    %c0_i32 = arith.constant 0 : i32
    %c0_i32_0 = arith.constant 0 : i32
    %c0_i32_1 = arith.constant 0 : i32
    return %c0_i32, %c0_i32_0 : i32, i32
  }
  func.func @transform_7(%arg0: i32) -> (i32, i32) {
    %c0_i32 = arith.constant 0 : i32
    %c0_i32_0 = arith.constant 0 : i32
    return %c0_i32, %arg0 : i32, i32
  }
}

</mosaic_0001>

<bundles_post_ra>
// kernel: net_forward.1
= control target key start
LH: loop header
LB: loop body
LE: loop exit
PB: predicated region body
PF: predicated region fallthrough
CT: control target
= control target key end

     0   :  { %v722_v0 = vmov 0   ;;  %s1078_s1 = inlined_call_operand.vmem [shape: f32[128,1], index: 1, kind: input, shape index: {}]   ;;  %s1079_s0 = inlined_call_operand.vmem [shape: f32[1,128], index: 0, kind: input, shape index: {}]   ;;  %s1080_s2 = inlined_call_operand.vmem [shape: f32[128,1], index: 2, kind: input, shape index: {}]   ;;  %s1081_s4 = inlined_call_operand.vmem [shape: f32[128,1], index: 4, kind: input, shape index: {}]   ;;  %s1082_s5 = inlined_call_operand.vmem [shape: f32[128,1], index: 5, kind: input, shape index: {}]   ;;  %s1083_s3 = inlined_call_operand.vmem [shape: f32[128,128], index: 3, kind: input, shape index: {}]   ;;  %s1084_s6 = inlined_call_operand.<no memory space> [shape: f32[1,1], index: 6, kind: input, shape index: {}]   ;;  %s1085_s7 = inlined_call_operand.vmem [shape: f32[1,128], index: 7, kind: output, shape index: {}]  }
   0x1   :  { %656 = vset.pattern.permute.xlu2 %v722_v0  ;;  %655 = vset.pattern.permute.xlu1 %v722_v0  ;;  %v32_v1 = vld [vmem:[%s1078_s1 + $0x20] sm:$0xff]  ;;  %v30_v2 = vld [vmem:[%s1078_s1 + $0x10] sm:$0xff]  ;;  %v33_v4 = vld [vmem:[%s1078_s1 + $0x28] sm:$0xff] }
   0x2   :  { %v28_v3 = vld [vmem:[%s1078_s1] sm:$0xff]  ;;  %654 = vset.pattern.permute.xlu0 %v722_v0  ;;  %66 = vperm.xlu2 %656, %v32_v1   ;;  %v31_v5 = vld [vmem:[%s1078_s1 + $0x18] sm:$0xff]  ;;  %v29_v6 = vld [vmem:[%s1078_s1 + $0x8] sm:$0xff] }
   0x3   :  { %56 = vperm.xlu1 %655, %v30_v2   ;;  %46 = vperm.xlu0 %654, %v28_v3   ;;  %v36_v7 = vld [vmem:[%s1078_s1 + $0x40] sm:$0xff]  ;;  %v35_v8 = vld [vmem:[%s1078_s1 + $0x38] sm:$0xff]  ;;  %v34_v9 = vld [vmem:[%s1078_s1 + $0x30] sm:$0xff] }
   0x4   :  { %v39_v10 = vld [vmem:[%s1078_s1 + $0x58] sm:$0xff]  ;;  %v38_v11 = vld [vmem:[%s1078_s1 + $0x50] sm:$0xff]  ;;  %v37_v12 = vld [vmem:[%s1078_s1 + $0x48] sm:$0xff] }
   0x5   :  { %v42_v13 = vld [vmem:[%s1078_s1 + $0x70] sm:$0xff]  ;;  %v41_v14 = vld [vmem:[%s1078_s1 + $0x68] sm:$0xff]  ;;  %v40_v15 = vld [vmem:[%s1078_s1 + $0x60] sm:$0xff] }
   0x6   :  { %v144_v16 = vld [vmem:[%s1080_s2 + $0x8] sm:$0xff]  ;;  %v143_v17 = vld [vmem:[%s1080_s2] sm:$0xff]  ;;  %v43_v18 = vld [vmem:[%s1078_s1 + $0x78] sm:$0xff] }
   0x7   :  { %v156_v19 = vld [vmem:[%s1080_s2 + $0x68] sm:$0xff]  ;;  %v157_v20 = vld [vmem:[%s1080_s2 + $0x70] sm:$0xff]  ;;  %v158_v21 = vld [vmem:[%s1080_s2 + $0x78] sm:$0xff] }
   0x8   :  { %v153_v22 = vld [vmem:[%s1080_s2 + $0x50] sm:$0xff]  ;;  %v154_v23 = vld [vmem:[%s1080_s2 + $0x58] sm:$0xff]  ;;  %v155_v24 = vld [vmem:[%s1080_s2 + $0x60] sm:$0xff] }
   0x9   :  { %v150_v25 = vld [vmem:[%s1080_s2 + $0x38] sm:$0xff]  ;;  %v151_v26 = vld [vmem:[%s1080_s2 + $0x40] sm:$0xff]  ;;  %v152_v27 = vld [vmem:[%s1080_s2 + $0x48] sm:$0xff] }
   0xa   :  { %71 = vperm.xlu2 %656, %v33_v4   ;;  %v147_v28 = vld [vmem:[%s1080_s2 + $0x20] sm:$0xff]  ;;  %v148_v29 = vld [vmem:[%s1080_s2 + $0x28] sm:$0xff]  ;;  %v149_v30 = vld [vmem:[%s1080_s2 + $0x30] sm:$0xff] }
   0xb   :  { %61 = vperm.xlu1 %655, %v31_v5   ;;  %51 = vperm.xlu0 %654, %v29_v6   ;;  %v287_v31 = vld [vmem:[%s1081_s4] sm:$0xff]  ;;  %v145_v32 = vld [vmem:[%s1080_s2 + $0x10] sm:$0xff]  ;;  %v146_v33 = vld [vmem:[%s1080_s2 + $0x18] sm:$0xff] }
   0xc   :  { %v290_v34 = vld [vmem:[%s1081_s4 + $0x18] sm:$0xff]  ;;  %v289_v35 = vld [vmem:[%s1081_s4 + $0x10] sm:$0xff]  ;;  %v288_v36 = vld [vmem:[%s1081_s4 + $0x8] sm:$0xff] }
   0xd   :  { %v874_v37 = vld [vmem:[%s1079_s0] ss:$0 sm:$0xff]  ;;  %v293_v40 = vld [vmem:[%s1081_s4 + $0x30] sm:$0xff]  ;;  %v292_v41 = vld [vmem:[%s1081_s4 + $0x28] sm:$0xff] }
   0xe   :  { %v291_v42 = vld [vmem:[%s1081_s4 + $0x20] sm:$0xff]  ;;  %v296_v43 = vld [vmem:[%s1081_s4 + $0x48] sm:$0xff]  ;;  %v294_v45 = vld [vmem:[%s1081_s4 + $0x38] sm:$0xff] }
   0xf   :  { %v295_v44 = vld [vmem:[%s1081_s4 + $0x40] sm:$0xff]  ;;  %v298_v48 = vld [vmem:[%s1081_s4 + $0x58] sm:$0xff]  ;;  %v297_v49 = vld [vmem:[%s1081_s4 + $0x50] sm:$0xff] }
  0x10   :  { %v299_v47 = vld [vmem:[%s1081_s4 + $0x60] sm:$0xff]  ;;  %v302_v54 = vld [vmem:[%s1081_s4 + $0x78] sm:$0xff]  ;;  %v301_v56 = vld [vmem:[%s1081_s4 + $0x70] sm:$0xff] }
  0x11   :  { %v300_v57 = vld [vmem:[%s1081_s4 + $0x68] sm:$0xff]  ;;  %v466_v62 = vld [vmem:[%s1082_s5 + $0x10] sm:$0xff]  ;;  %v464_v0 = vld [vmem:[%s1082_s5] sm:$0xff] }
  0x12   :  { %86 = vperm.xlu2 %656, %v36_v7   ;;  %v465_v63 = vld [vmem:[%s1082_s5 + $0x8] sm:$0xff]  ;;  %v468_v5 = vld [vmem:[%s1082_s5 + $0x20] sm:$0xff]  ;;  %v467_v6 = vld [vmem:[%s1082_s5 + $0x18] sm:$0xff] }
  0x13   :  { %81 = vperm.xlu1 %655, %v35_v8   ;;  %76 = vperm.xlu0 %654, %v34_v9   ;;  %v469_v4 = vld [vmem:[%s1082_s5 + $0x28] sm:$0xff] }
  0x1a   :  { %101 = vperm.xlu2 %656, %v39_v10   ;;  %v472_v10 = vld [vmem:[%s1082_s5 + $0x40] sm:$0xff] }
  0x1b   :  { %96 = vperm.xlu1 %655, %v38_v11   ;;  %91 = vperm.xlu0 %654, %v37_v12   ;;  %v471_v11 = vld [vmem:[%s1082_s5 + $0x38] sm:$0xff]  ;;  %v470_v12 = vld [vmem:[%s1082_s5 + $0x30] sm:$0xff] }
  0x22   :  { %116 = vperm.xlu2 %656, %v42_v13  }
  0x23   :  { %111 = vperm.xlu1 %655, %v41_v14   ;;  %106 = vperm.xlu0 %654, %v40_v15  }
  0x2a   :  { %166 = vperm.xlu2 %656, %v144_v16   ;;  %v475_v16 = vld [vmem:[%s1082_s5 + $0x58] sm:$0xff] }
  0x2b   :  { %161 = vperm.xlu1 %655, %v143_v17   ;;  %121 = vperm.xlu0 %654, %v43_v18   ;;  %v474_v17 = vld [vmem:[%s1082_s5 + $0x50] sm:$0xff]  ;;  %v473_v18 = vld [vmem:[%s1082_s5 + $0x48] sm:$0xff] }
  0x32   :  { %226 = vperm.xlu2 %656, %v156_v19  }
  0x33   :  { %231 = vperm.xlu1 %655, %v157_v20   ;;  %236 = vperm.xlu0 %654, %v158_v21   ;;  %v478_v21 = vld [vmem:[%s1082_s5 + $0x70] sm:$0xff] }
  0x3a   :  { %211 = vperm.xlu2 %656, %v153_v22  }
  0x3b   :  { %216 = vperm.xlu1 %655, %v154_v23   ;;  %221 = vperm.xlu0 %654, %v155_v24   ;;  %v477_v23 = vld [vmem:[%s1082_s5 + $0x68] sm:$0xff]  ;;  %v476_v24 = vld [vmem:[%s1082_s5 + $0x60] sm:$0xff] }
  0x42   :  { %196 = vperm.xlu2 %656, %v150_v25  }
  0x43   :  { %201 = vperm.xlu1 %655, %v151_v26   ;;  %206 = vperm.xlu0 %654, %v152_v27  }
  0x4a   :  { %181 = vperm.xlu2 %656, %v147_v28  }
  0x4b   :  { %186 = vperm.xlu1 %655, %v148_v29   ;;  %191 = vperm.xlu0 %654, %v149_v30  }
  0x52   :  { %305 = vperm.xlu2 %656, %v287_v31  }
  0x53   :  { %171 = vperm.xlu1 %655, %v145_v32   ;;  %176 = vperm.xlu0 %654, %v146_v33   ;;  %v479_v32 = vld [vmem:[%s1082_s5 + $0x78] sm:$0xff] }
  0x5a   :  { %320 = vperm.xlu2 %656, %v290_v34  }
  0x5b   :  { %315 = vperm.xlu1 %655, %v289_v35   ;;  %310 = vperm.xlu0 %654, %v288_v36  }
  0x5c   :  { %v67_v38 = vpop.permute.xlu2 %66 }
  0x5d   :  { %v877_v39 = vmul.f32 %v874_v37, %v67_v38 }
  0x62   :  { %335 = vperm.xlu2 %656, %v293_v40  }
  0x63   :  { %330 = vperm.xlu1 %655, %v292_v41   ;;  %325 = vperm.xlu0 %654, %v291_v42  }
  0x64   :  { %v897_v46 = vpop.permute.xlu2 %71 }
  0x6a   :  { %350 = vperm.xlu2 %656, %v296_v43  }
  0x6b   :  { %345 = vperm.xlu1 %655, %v295_v44   ;;  %340 = vperm.xlu0 %654, %v294_v45  }
  0x6c   :  { %v917_v55 = vpop.permute.xlu2 %86 }
  0x72   :  { %365 = vperm.xlu2 %656, %v299_v47  }
  0x73   :  { %360 = vperm.xlu1 %655, %v298_v48   ;;  %355 = vperm.xlu0 %654, %v297_v49  }
  0x74   :  { %v102_v1 = vpop.permute.xlu2 %101 }
  0x75   :  { %v57_v50 = vpop.permute.xlu1 %56  ;;  %v47_v51 = vpop.permute.xlu0 %46  ;;  %v138_v36 = vmul.f32 %v874_v37, %v102_v1 }
  0x76   :  { %v909_v52 = vmul.f32 %v874_v37, %v57_v50  ;;  %v912_v53 = vmul.f32 %v874_v37, %v47_v51  ;;  %v135_v51 = vmul.f32 %v874_v37, %v917_v55 }
  0x7a   :  { %380 = vperm.xlu2 %656, %v302_v54  }
  0x7b   :  { %375 = vperm.xlu1 %655, %v301_v56   ;;  %370 = vperm.xlu0 %654, %v300_v57  }
  0x7c   :  { %v117_v7 = vpop.permute.xlu2 %116 }
  0x7d   :  { %v62_v58 = vpop.permute.xlu1 %61  ;;  %v52_v59 = vpop.permute.xlu0 %51  ;;  %v141_v26 = vmul.f32 %v874_v37, %v117_v7 }
  0x7e   :  { %v926_v60 = vmul.f32 %v874_v37, %v62_v58  ;;  %v929_v61 = vmul.f32 %v874_v37, %v52_v59 }
  0x82   :  { %492 = vperm.xlu2 %656, %v466_v62  }
  0x83   :  { %487 = vperm.xlu1 %655, %v465_v63   ;;  %482 = vperm.xlu0 %654, %v464_v0  }
  0x84   :  { %v962_v15 = vpop.permute.xlu2 %166 }
  0x85   :  { %v940_v2 = vpop.permute.xlu1 %81  ;;  %v942_v3 = vpop.permute.xlu0 %76 }
  0x86   :  { %v134_v59 = vmul.f32 %v874_v37, %v940_v2  ;;  %v133_v1 = vmul.f32 %v874_v37, %v942_v3  ;;  %v132_v2 = vmul.f32 %v874_v37, %v897_v46 }
  0x8a   :  { %507 = vperm.xlu2 %656, %v469_v4  }
  0x8b   :  { %502 = vperm.xlu1 %655, %v468_v5   ;;  %497 = vperm.xlu0 %654, %v467_v6  }
  0x8c   :  { %v227_v22 = vpop.permute.xlu2 %226 }
  0x8d   :  { %v97_v8 = vpop.permute.xlu1 %96  ;;  %v92_v9 = vpop.permute.xlu0 %91 }
  0x8e   :  { %v137_v43 = vmul.f32 %v874_v37, %v97_v8  ;;  %v136_v49 = vmul.f32 %v874_v37, %v92_v9 }
  0x92   :  { %522 = vperm.xlu2 %656, %v472_v10  }
  0x93   :  { %517 = vperm.xlu1 %655, %v471_v11   ;;  %512 = vperm.xlu0 %654, %v470_v12  }
  0x94   :  { %v212_v34 = vpop.permute.xlu2 %211 }
  0x95   :  { %v112_v13 = vpop.permute.xlu1 %111  ;;  %v107_v14 = vpop.permute.xlu0 %106  ;;  %v249_v47 = vadd.f32 %v212_v34, %v137_v43 }
  0x96   :  { %v140_v27 = vmul.f32 %v874_v37, %v112_v13  ;;  %v139_v35 = vmul.f32 %v874_v37, %v107_v14 }
  0x98   :  { %v252_v33 = vadd.f32 %v227_v22, %v140_v27  ;;  %v272_v22 = vld [vmem:[%s1083_s3 + $0x8] sm:$0xff]  ;;  %v277_v27 = vld [vmem:[%s1083_s3 + $0x30] sm:$0xff] }
  0x9a   :  { %537 = vperm.xlu2 %656, %v475_v16   ;;  %v240_v16 = vadd.f32 %v962_v15, %v929_v61  ;;  %v271_v15 = vld [vmem:[%s1083_s3] sm:$0xff] }
  0x9b   :  { %532 = vperm.xlu1 %655, %v474_v17   ;;  %527 = vperm.xlu0 %654, %v473_v18  }
  0x9c   :  { %v197_v50 = vpop.permute.xlu2 %196 }
  0x9d   :  { %v973_v19 = vpop.permute.xlu1 %161  ;;  %v122_v20 = vpop.permute.xlu0 %121  ;;  %v246_v0 = vadd.f32 %v197_v50, %v134_v59 }
  0x9e   :  { %v142_v25 = vmul.f32 %v874_v37, %v122_v20  ;;  %v239_v18 = vadd.f32 %v973_v19, %v912_v53  ;;  %v275_v19 = vld [vmem:[%s1083_s3 + $0x20] sm:$0xff] }
  0x9f   :  { %v279_v20 = vld [vmem:[%s1083_s3 + $0x40] sm:$0xff] }
  0xa2   :  { %552 = vperm.xlu2 %656, %v478_v21   ;;  %v283_v21 = vld [vmem:[%s1083_s3 + $0x60] sm:$0xff] }
  0xa3   :  { %547 = vperm.xlu1 %655, %v477_v23   ;;  %542 = vperm.xlu0 %654, %v476_v24   ;;  %v276_v23 = vld [vmem:[%s1083_s3 + $0x28] sm:$0xff] }
  0xa4   :  { %v182_v6 = vpop.permute.xlu2 %181  ;;  %v280_v24 = vld [vmem:[%s1083_s3 + $0x48] sm:$0xff] }
  0xa5   :  { %v232_v28 = vpop.permute.xlu1 %231  ;;  %v237_v29 = vpop.permute.xlu0 %236  ;;  %v243_v11 = vadd.f32 %v182_v6, %v877_v39 }
  0xa6   :  { %v254_v30 = vadd.f32 %v237_v29, %v142_v25  ;;  %v253_v31 = vadd.f32 %v232_v28, %v141_v26  ;;  %v284_v25 = vld [vmem:[%s1083_s3 + $0x68] sm:$0xff]  ;;  %v273_v26 = vld [vmem:[%s1083_s3 + $0x10] sm:$0xff] }
  0xa7   :  { %v281_v28 = vld [vmem:[%s1083_s3 + $0x50] sm:$0xff] }
  0xa8   :  { %658 = vtanh.f32 %v254_v30  ;;  %v285_v29 = vld [vmem:[%s1083_s3 + $0x70] sm:$0xff]  ;;  %v274_v30 = vld [vmem:[%s1083_s3 + $0x18] sm:$0xff] }
  0xa9   :  { %660 = vtanh.f32 %v253_v31  ;;  %v278_v31 = vld [vmem:[%s1083_s3 + $0x38] sm:$0xff] }
  0xaa   :  { %662 = vtanh.f32 %v252_v33  ;;  %v286_v33 = vld [vmem:[%s1083_s3 + $0x78] sm:$0xff] }
  0xab   :  { %557 = vperm.xlu0 %654, %v479_v32   ;;  %v282_v32 = vld [vmem:[%s1083_s3 + $0x58] sm:$0xff] }
  0xac   :  { %v306_v34 = vpop.permute.xlu2 %305 }
  0xad   :  { %v217_v38 = vpop.permute.xlu1 %216  ;;  %v222_v40 = vpop.permute.xlu0 %221 }
  0xae   :  { %v251_v41 = vadd.f32 %v222_v40, %v139_v35  ;;  %v659_v42 = vpop.eup %658  ;;  %v250_v44 = vadd.f32 %v217_v38, %v138_v36 }
  0xaf   :  { %383 = vmatpush.msra.mxu0 %v659_v42  ;;  %605 = vmatpush.msra.mxu1 %v659_v42  ;;  %v661_v45 = vpop.eup %660 }
  0xb0   :  { %664 = vtanh.f32 %v251_v41  ;;  %606 = vmatpush.msra.mxu2 %v659_v42  ;;  %607 = vmatpush.msra.mxu3 %v659_v42  ;;  %v663_v48 = vpop.eup %662 }
  0xb1   :  { %384 = vmatpush.msra.mxu0 %v661_v45  ;;  %608 = vmatpush.msra.mxu1 %v661_v45  ;;  %666 = vtanh.f32 %v250_v44 }
  0xb2   :  { %609 = vmatpush.msra.mxu2 %v661_v45  ;;  %610 = vmatpush.msra.mxu3 %v661_v45  ;;  %668 = vtanh.f32 %v249_v47 }
  0xb3   :  { %385 = vmatpush.msra.mxu0 %v663_v48  ;;  %611 = vmatpush.msra.mxu1 %v663_v48 }
  0xb4   :  { %612 = vmatpush.msra.mxu2 %v663_v48  ;;  %613 = vmatpush.msra.mxu3 %v663_v48  ;;  %v321_v38 = vpop.permute.xlu2 %320 }
  0xb5   :  { %v202_v54 = vpop.permute.xlu1 %201  ;;  %v207_v56 = vpop.permute.xlu0 %206 }
  0xb6   :  { %v248_v57 = vadd.f32 %v207_v56, %v136_v49  ;;  %v665_v58 = vpop.eup %664  ;;  %v247_v62 = vadd.f32 %v202_v54, %v135_v51 }
  0xb7   :  { %386 = vmatpush.msra.mxu0 %v665_v58  ;;  %614 = vmatpush.msra.mxu1 %v665_v58  ;;  %v667_v63 = vpop.eup %666 }
  0xb8   :  { %670 = vtanh.f32 %v248_v57  ;;  %615 = vmatpush.msra.mxu2 %v665_v58  ;;  %616 = vmatpush.msra.mxu3 %v665_v58  ;;  %v669_v55 = vpop.eup %668 }
  0xb9   :  { %387 = vmatpush.msra.mxu0 %v667_v63  ;;  %617 = vmatpush.msra.mxu1 %v667_v63  ;;  %672 = vtanh.f32 %v247_v62 }
  0xba   :  { %618 = vmatpush.msra.mxu2 %v667_v63  ;;  %619 = vmatpush.msra.mxu3 %v667_v63  ;;  %674 = vtanh.f32 %v246_v0 }
  0xbb   :  { %388 = vmatpush.msra.mxu0 %v669_v55  ;;  %620 = vmatpush.msra.mxu1 %v669_v55 }
  0xbc   :  { %621 = vmatpush.msra.mxu2 %v669_v55  ;;  %622 = vmatpush.msra.mxu3 %v669_v55  ;;  %v336_v42 = vpop.permute.xlu2 %335 }
  0xbd   :  { %v187_v4 = vpop.permute.xlu1 %186  ;;  %v192_v5 = vpop.permute.xlu0 %191 }
  0xbe   :  { %v245_v7 = vadd.f32 %v192_v5, %v133_v1  ;;  %v671_v8 = vpop.eup %670  ;;  %v244_v9 = vadd.f32 %v187_v4, %v132_v2 }
  0xbf   :  { %389 = vmatpush.msra.mxu0 %v671_v8  ;;  %623 = vmatpush.msra.mxu1 %v671_v8  ;;  %v673_v10 = vpop.eup %672 }
  0xc0   :  { %676 = vtanh.f32 %v245_v7  ;;  %624 = vmatpush.msra.mxu2 %v671_v8  ;;  %625 = vmatpush.msra.mxu3 %v671_v8  ;;  %v675_v37 = vpop.eup %674 }
  0xc1   :  { %390 = vmatpush.msra.mxu0 %v673_v10  ;;  %626 = vmatpush.msra.mxu1 %v673_v10  ;;  %678 = vtanh.f32 %v244_v9 }
  0xc2   :  { %627 = vmatpush.msra.mxu2 %v673_v10  ;;  %628 = vmatpush.msra.mxu3 %v673_v10  ;;  %680 = vtanh.f32 %v243_v11 }
  0xc3   :  { %391 = vmatpush.msra.mxu0 %v675_v37  ;;  %629 = vmatpush.msra.mxu1 %v675_v37 }
  0xc4   :  { %630 = vmatpush.msra.mxu2 %v675_v37  ;;  %631 = vmatpush.msra.mxu3 %v675_v37  ;;  %v351_v45 = vpop.permute.xlu2 %350 }
  0xc5   :  { %v172_v46 = vpop.permute.xlu1 %171  ;;  %v177_v3 = vpop.permute.xlu0 %176 }
  0xc6   :  { %v242_v12 = vadd.f32 %v177_v3, %v926_v60  ;;  %v677_v13 = vpop.eup %676  ;;  %v241_v39 = vadd.f32 %v172_v46, %v909_v52 }
  0xc7   :  { %392 = vmatpush.msra.mxu0 %v677_v13  ;;  %632 = vmatpush.msra.mxu1 %v677_v13  ;;  %v679_v14 = vpop.eup %678 }
  0xc8   :  { %682 = vtanh.f32 %v242_v12  ;;  %633 = vmatpush.msra.mxu2 %v677_v13  ;;  %634 = vmatpush.msra.mxu3 %v677_v13  ;;  %v681_v17 = vpop.eup %680 }
  0xc9   :  { %393 = vmatpush.msra.mxu0 %v679_v14  ;;  %635 = vmatpush.msra.mxu1 %v679_v14  ;;  %684 = vtanh.f32 %v241_v39 }
  0xca   :  { %636 = vmatpush.msra.mxu2 %v679_v14  ;;  %637 = vmatpush.msra.mxu3 %v679_v14  ;;  %686 = vtanh.f32 %v240_v16 }
  0xcb   :  { %394 = vmatpush.msra.mxu0 %v681_v17  ;;  %638 = vmatpush.msra.mxu1 %v681_v17  ;;  %688 = vtanh.f32 %v239_v18 }
  0xcc   :  { %639 = vmatpush.msra.mxu2 %v681_v17  ;;  %640 = vmatpush.msra.mxu3 %v681_v17  ;;  %v1059_v49 = vpop.permute.xlu2 %365 }
  0xcd   :  { %v311_v35 = vpop.permute.xlu0 %310  ;;  %v316_v36 = vpop.permute.xlu1 %315 }
  0xce   :  { %v683_v52 = vpop.eup %682 }
  0xcf   :  { %395 = vmatpush.msra.mxu0 %v683_v52  ;;  %641 = vmatpush.msra.mxu1 %v683_v52  ;;  %v685_v60 = vpop.eup %684 }
  0xd0   :  { %642 = vmatpush.msra.mxu2 %v683_v52  ;;  %643 = vmatpush.msra.mxu3 %v683_v52  ;;  %v687_v61 = vpop.eup %686 }
  0xd1   :  { %396 = vmatpush.msra.mxu0 %v685_v60  ;;  %644 = vmatpush.msra.mxu1 %v685_v60  ;;  %v689_v53 = vpop.eup %688 }
  0xd2   :  { %645 = vmatpush.msra.mxu2 %v685_v60  ;;  %646 = vmatpush.msra.mxu3 %v685_v60 }
  0xd3   :  { %397 = vmatpush.msra.mxu0 %v687_v61  ;;  %647 = vmatpush.msra.mxu1 %v687_v61 }
  0xd4   :  { %648 = vmatpush.msra.mxu2 %v687_v61  ;;  %649 = vmatpush.msra.mxu3 %v687_v61  ;;  %v1065_v57 = vpop.permute.xlu2 %380 }
  0xd5   :  { %398 = vmatpush.msra.mxu0 %v689_v53  ;;  %650 = vmatpush.msra.mxu1 %v689_v53  ;;  %v326_v40 = vpop.permute.xlu0 %325  ;;  %v331_v41 = vpop.permute.xlu1 %330 }
  0xd6   :  { %651 = vmatpush.msra.mxu2 %v689_v53  ;;  %652 = vmatpush.msra.mxu3 %v689_v53 }
  0xd7   :  { %399 = vmatmul.f32.vlgmr.msra.gmra.mxu0 %v271_v15  ;;  %411 = vmatmul.f32.vlgmr.msra.gmra.mxu1 %v275_v19 }
  0xd8   :  { %423 = vmatmul.f32.vlgmr.msra.gmra.mxu2 %v279_v20  ;;  %435 = vmatmul.f32.vlgmr.msra.gmra.mxu3 %v283_v21 }
  0xdc   :  { %v493_v2 = vpop.permute.xlu2 %492 }
  0xdd   :  { %v341_v43 = vpop.permute.xlu0 %340  ;;  %v346_v44 = vpop.permute.xlu1 %345 }
  0xdf   :  { %402 = vmatmul.f32.gmra.mxu0 %v272_v22  ;;  %414 = vmatmul.f32.gmra.mxu1 %v276_v23 }
  0xe0   :  { %426 = vmatmul.f32.gmra.mxu2 %v280_v24  ;;  %438 = vmatmul.f32.gmra.mxu3 %v284_v25 }
  0xe4   :  { %v508_v39 = vpop.permute.xlu2 %507 }
  0xe5   :  { %v356_v47 = vpop.permute.xlu0 %355  ;;  %v1057_v48 = vpop.permute.xlu1 %360 }
  0xe7   :  { %405 = vmatmul.f32.gmra.mxu0 %v273_v26  ;;  %417 = vmatmul.f32.gmra.mxu1 %v277_v27 }
  0xe8   :  { %429 = vmatmul.f32.gmra.mxu2 %v281_v28  ;;  %441 = vmatmul.f32.gmra.mxu3 %v285_v29 }
  0xed   :  { %v1061_v50 = vpop.permute.xlu0 %370  ;;  %v1063_v56 = vpop.permute.xlu1 %375 }
  0xef   :  { %408 = vmatmul.f32.gmra.mxu0 %v274_v30  ;;  %420 = vmatmul.f32.gmra.mxu1 %v278_v31  ;;  %v523_v31 = vpop.permute.xlu2 %522 }
  0xf0   :  { %432 = vmatmul.f32.gmra.mxu2 %v282_v32  ;;  %444 = vmatmul.f32.gmra.mxu3 %v286_v33 }
  0xf5   :  { %v483_v58 = vpop.permute.xlu0 %482  ;;  %v488_v55 = vpop.permute.xlu1 %487 }
  0xfd   :  { %v498_v8 = vpop.permute.xlu0 %497  ;;  %v503_v37 = vpop.permute.xlu1 %502 }
 0x105   :  { %v513_v52 = vpop.permute.xlu0 %512  ;;  %v518_v25 = vpop.permute.xlu1 %517 }
 0x154   :  { %v400_v51 = vpop.f32.mrf.mxu0  ;;  %v412_v54 = vpop.f32.mrf.mxu1 }
 0x155   :  { %v401_v6 = vadd.f32 %v400_v51, %v306_v34  ;;  %v413_v10 = vadd.f32 %v412_v54, %v326_v40 }
 0x15b   :  { %v424_v59 = vpop.f32.mrf.mxu2  ;;  %v436_v0 = vpop.f32.mrf.mxu3 }
 0x15c   :  { %v403_v62 = vpop.f32.mrf.mxu0  ;;  %v415_v63 = vpop.f32.mrf.mxu1  ;;  %v425_v20 = vadd.f32 %v424_v59, %v346_v44 }
 0x15d   :  { %v404_v4 = vadd.f32 %v403_v62, %v311_v35  ;;  %v416_v14 = vadd.f32 %v415_v63, %v331_v41  ;;  %v533_v63 = vpop.permute.xlu1 %532 }
 0x15f   :  { %690 = vtanh.f32 %v404_v4  ;;  %v538_v4 = vpop.permute.xlu2 %537 }
 0x160   :  { %692 = vtanh.f32 %v401_v6 }
 0x163   :  { %v427_v1 = vpop.f32.mrf.mxu2  ;;  %v439_v11 = vpop.f32.mrf.mxu3 }
 0x164   :  { %v406_v5 = vpop.f32.mrf.mxu0  ;;  %v418_v7 = vpop.f32.mrf.mxu1  ;;  %v428_v26 = vadd.f32 %v427_v1, %v351_v45  ;;  %v440_v54 = vadd.f32 %v439_v11, %v1061_v50 }
 0x165   :  { %v407_v9 = vadd.f32 %v406_v5, %v316_v36  ;;  %v691_v13 = vpop.eup %690  ;;  %v419_v60 = vadd.f32 %v418_v7, %v336_v42  ;;  %v528_v36 = vpop.permute.xlu0 %527 }
 0x166   :  { %v693_v16 = vpop.eup %692  ;;  %v561_v61 = vmul.f32 %v691_v13, %v488_v55 }
 0x167   :  { %694 = vtanh.f32 %v407_v9  ;;  %v560_v15 = vmul.f32 %v693_v16, %v483_v58 }
 0x168   :  { %696 = vtanh.f32 %v413_v10 }
 0x169   :  { %v576_v22 = vadd.f32 %v561_v61, %v560_v15 }
 0x16b   :  { %v430_v3 = vpop.f32.mrf.mxu2  ;;  %v442_v23 = vpop.f32.mrf.mxu3 }
 0x16c   :  { %v409_v46 = vpop.f32.mrf.mxu0  ;;  %v421_v17 = vpop.f32.mrf.mxu1  ;;  %v431_v32 = vadd.f32 %v430_v3, %v356_v47 }
 0x16d   :  { %v410_v12 = vadd.f32 %v409_v46, %v321_v38  ;;  %v695_v18 = vpop.eup %694  ;;  %v422_v53 = vadd.f32 %v421_v17, %v341_v43  ;;  %v437_v43 = vadd.f32 %v436_v0, %v1059_v49  ;;  %v543_v50 = vpop.permute.xlu0 %542 }
 0x16e   :  { %v562_v19 = vmul.f32 %v695_v18, %v493_v2  ;;  %v697_v21 = vpop.eup %696 }
 0x16f   :  { %698 = vtanh.f32 %v410_v12  ;;  %v564_v33 = vmul.f32 %v697_v21, %v503_v37  ;;  %v548_v12 = vpop.permute.xlu1 %547 }
 0x170   :  { %700 = vtanh.f32 %v416_v14  ;;  %v577_v27 = vadd.f32 %v576_v22, %v562_v19  ;;  %v598_v22 = vstv %s1084_s6 }
 0x171   :  { %702 = vtanh.f32 %v419_v60 }
 0x172   :  { %704 = vtanh.f32 %v422_v53 }
 0x173   :  { %v433_v29 = vpop.f32.mrf.mxu2  ;;  %706 = vtanh.f32 %v425_v20  ;;  %v445_v59 = vpop.f32.mrf.mxu3 }
 0x174   :  { %708 = vtanh.f32 %v428_v26  ;;  %v434_v38 = vadd.f32 %v433_v29, %v1057_v48  ;;  %v443_v48 = vadd.f32 %v442_v23, %v1063_v56  ;;  %v446_v49 = vadd.f32 %v445_v59, %v1065_v57  ;;  %v553_v57 = vpop.permute.xlu2 %552 }
 0x175   :  { %v699_v24 = vpop.eup %698  ;;  %710 = vtanh.f32 %v431_v32  ;;  %v558_v18 = vpop.permute.xlu0 %557 }
 0x176   :  { %v563_v28 = vmul.f32 %v699_v24, %v498_v8  ;;  %v701_v30 = vpop.eup %700  ;;  %712 = vtanh.f32 %v434_v38 }
 0x177   :  { %v703_v35 = vpop.eup %702  ;;  %v565_v40 = vmul.f32 %v701_v30, %v508_v39  ;;  %714 = vtanh.f32 %v437_v43 }
 0x178   :  { %v578_v34 = vadd.f32 %v577_v27, %v563_v28  ;;  %v705_v42 = vpop.eup %704  ;;  %v566_v44 = vmul.f32 %v703_v35, %v513_v52  ;;  %716 = vtanh.f32 %v440_v54 }
 0x179   :  { %v707_v51 = vpop.eup %706  ;;  %v567_v47 = vmul.f32 %v705_v42, %v518_v25  ;;  %718 = vtanh.f32 %v443_v48 }
 0x17a   :  { %v579_v41 = vadd.f32 %v578_v34, %v564_v33  ;;  %v709_v62 = vpop.eup %708  ;;  %v568_v55 = vmul.f32 %v707_v51, %v523_v31  ;;  %720 = vtanh.f32 %v446_v49 }
 0x17b   :  { %v711_v2 = vpop.eup %710  ;;  %v569_v0 = vmul.f32 %v709_v62, %v528_v36 }
 0x17c   :  { %v580_v45 = vadd.f32 %v579_v41, %v565_v40  ;;  %v713_v6 = vpop.eup %712  ;;  %v570_v7 = vmul.f32 %v711_v2, %v533_v63 }
 0x17d   :  { %v715_v9 = vpop.eup %714  ;;  %v571_v10 = vmul.f32 %v713_v6, %v538_v4 }
 0x17e   :  { %v581_v58 = vadd.f32 %v580_v45, %v566_v44  ;;  %v717_v37 = vpop.eup %716  ;;  %v572_v56 = vmul.f32 %v715_v9, %v543_v50 }
 0x17f   :  { %v719_v3 = vpop.eup %718  ;;  %v573_v13 = vmul.f32 %v717_v37, %v548_v12 }
 0x180   :  { %v582_v1 = vadd.f32 %v581_v58, %v567_v47  ;;  %v721_v14 = vpop.eup %720  ;;  %v574_v16 = vmul.f32 %v719_v3, %v553_v57 }
 0x181   :  { %v575_v52 = vmul.f32 %v721_v14, %v558_v18 }
 0x182   :  { %v583_v5 = vadd.f32 %v582_v1, %v568_v55 }
 0x184   :  { %v584_v8 = vadd.f32 %v583_v5, %v569_v0 }
 0x186   :  { %v585_v11 = vadd.f32 %v584_v8, %v570_v7 }
 0x188   :  { %v586_v46 = vadd.f32 %v585_v11, %v571_v10 }
 0x18a   :  { %v587_v39 = vadd.f32 %v586_v46, %v572_v56 }
 0x18c   :  { %v588_v17 = vadd.f32 %v587_v39, %v573_v13 }
 0x18e   :  { %v589_v60 = vadd.f32 %v588_v17, %v574_v16 }
 0x190   :  { %v590_v61 = vadd.f32 %v589_v60, %v575_v52 }
 0x192   :  { %v591_v53 = vrot.slane %v590_v61, 4 }
 0x194   :  { %v592_v15 = vadd.f32 %v591_v53, %v590_v61 }
 0x196   :  { %v593_v19 = vrot.slane %v592_v15, 2 }
 0x198   :  { %v594_v20 = vadd.f32 %v593_v19, %v592_v15 }
 0x19a   :  { %v595_v21 = vrot.slane %v594_v20, 1 }
 0x19c   :  { %v596_v23 = vadd.f32 %v595_v21, %v594_v20 }
 0x19e   :  { %v599_v24 = vadd.f32 %v598_v22, %v596_v23 }
 0x1a0   :  { %600 = vst [vmem:[%s1085_s7] sm:$0x1] %v599_v24 }

</bundles_post_ra>
